<compile_context>
chip_gen: v5e
topology: v5e:2x2
jax: 0.10.0
libtpu: 0.0.40
codegen_flags: <defaults>
</compile_context>

<pallas_src>
import math
import numpy as np
import jax
import jax.numpy as jnp
from jax.experimental import pallas as pl
from jax.experimental.pallas import tpu as pltpu


_ROW_TILE = 8            # sublane-aligned tile over the stacked (batch*anchor) rows
_LANE = 128              # TPU lane width
_LANE_TILE_MAX = 8192    # per-block lane extent cap (8 * 8192 * 4B = 256 KiB / block)
_NEG_PAD = -1e30         # softplus(-1e30) == 0 exactly in f32 -> padding is inert


def _round_up(x, m):
    return ((x + m - 1) // m) * m


def _softplus(x):
    # log(1 + exp(x)), numerically stable: 1 exp + 1 log per element (EUP).
    return jnp.maximum(x, 0.0) + jnp.log1p(jnp.exp(-jnp.abs(x)))


# ----------------------------- Pallas kernel ------------------------------ #

def _conf_softplus_partial_kernel(conf_ref, out_ref):
    """(ROW_TILE, LANE_TILE) conf logits -> (ROW_TILE, 128) partial softplus sums.

    Padding cells carry -1e30 and contribute exactly 0.  The per-tile partial
    is built with lane-aligned static slices (VPU adds only, no relayout) and
    stored lane-dense; cross-tile reduction happens in JAX on a tiny array.
    """
    x = conf_ref[...]
    sp = jnp.maximum(x, 0.0) + jnp.log1p(jnp.exp(-jnp.abs(x)))
    k = sp.shape[1] // _LANE
    acc = sp[:, 0:_LANE]
    for j in range(1, k):
        acc = acc + sp[:, j * _LANE:(j + 1) * _LANE]
    out_ref[...] = acc


def _run_conf_softplus(conf_all, lane_tile):
    rows, lanes = conf_all.shape
    gr = rows // _ROW_TILE
    gl = lanes // lane_tile
    return pl.pallas_call(
        _conf_softplus_partial_kernel,
        out_shape=jax.ShapeDtypeStruct((rows, gl * _LANE), jnp.float32),
        grid=(gr, gl),
        in_specs=[pl.BlockSpec((_ROW_TILE, lane_tile), lambda i, j: (i, j))],
        out_specs=pl.BlockSpec((_ROW_TILE, _LANE), lambda i, j: (i, j)),
        compiler_params=pltpu.CompilerParams(
            dimension_semantics=("parallel", "parallel"),
            vmem_limit_bytes=32 * 1024 * 1024,   # block set is O(100 KiB); explicit & portable
        ),
    )(conf_all)


# ------------------------------ Loss module -------------------------------- #

class YOLOv3LossPallas:
    def __init__(self, anchors, num_classes, img_size):
        self.anchors = [list(a) for a in anchors]
        self.num_anchors = len(anchors)          # matches PyTorch module semantics
        self.num_classes = num_classes
        self.bbox_attrs = 5 + num_classes
        self.img_size = img_size                 # (width, height)
        self.ignore_threshold = 0.5
        self.w_xy = 2.5
        self.w_wh = 2.5
        self.w_conf = 1.0
        self.w_cls = 1.0

    # Sparse target assignment: mirrors the PyTorch per-GT loops (including the
    # +1 pixel convention in bbox_iou and last-GT-wins overwrite semantics) but
    # only emits (row, col, value) tables -- no dense slabs, no big H2D copies.
    # TODO(synk): per-GT integer scatter with variable num_gt has no clean
    # in-kernel Pallas equivalent; it is done here in numpy on the host.
    def _build_targets_sparse(self, labels, scale_idx, map_h, map_w):
        B = labels.shape[0]
        A = self.num_anchors
        nlabel = (labels.sum(axis=2) > 0).sum(axis=1).astype(int)

        lab = labels.astype(np.float64).copy()
        lab[:, :, 1] /= self.img_size[0]
        lab[:, :, 3] /= self.img_size[0]
        lab[:, :, 2] /= self.img_size[1]
        lab[:, :, 4] /= self.img_size[1]

        stride_h = self.img_size[1] / map_h
        stride_w = self.img_size[0] / map_w
        scaled_anchors = [(aw / stride_w, ah / stride_h)
                          for aw, ah in self.anchors[scale_idx]]

        pos = {}     # (row, col) -> (tx, ty, tw, th, class); later GTs overwrite
        ign = set()  # (row, col) cells where noobj_mask is zeroed
        for b in range(B):
            for g in range(nlabel[b]):
                gx = lab[b, g, 1] * map_w
                gy = lab[b, g, 2] * map_h
                gw = lab[b, g, 3] * map_w
                gh = lab[b, g, 4] * map_h
                gi = int(gx)
                gj = int(gy)
                col = gj * map_w + gi
                ious = []
                for (aw, ah) in scaled_anchors:
                    iw = max(min(gw / 2, aw / 2) - max(-gw / 2, -aw / 2) + 1, 0.0)
                    ih = max(min(gh / 2, ah / 2) - max(-gh / 2, -ah / 2) + 1, 0.0)
                    inter = iw * ih
                    a1 = (gw + 1) * (gh + 1)
                    a2 = (aw + 1) * (ah + 1)
                    ious.append(inter / (a1 + a2 - inter + 1e-16))
                ious = np.asarray(ious)
                for a in np.nonzero(ious > self.ignore_threshold)[0]:
                    ign.add((b * A + int(a), col))
                best = int(np.argmax(ious))
                row = b * A + best
                pos[(row, col)] = (
                    float(gx - gi), float(gy - gj),
                    math.log(gw / scaled_anchors[best][0] + 1e-16),
                    math.log(gh / scaled_anchors[best][1] + 1e-16),
                    int(lab[b, g, 0]))

        keys = sorted(pos.keys())
        prow = np.array([k[0] for k in keys], np.int32)
        pcol = np.array([k[1] for k in keys], np.int32)
        ptx = np.array([pos[k][0] for k in keys], np.float32)
        pty = np.array([pos[k][1] for k in keys], np.float32)
        ptw = np.array([pos[k][2] for k in keys], np.float32)
        pth = np.array([pos[k][3] for k in keys], np.float32)
        pcid = np.array([pos[k][4] for k in keys], np.int32)
        ikeys = sorted(ign)
        irow = np.array([k[0] for k in ikeys], np.int32)
        icol = np.array([k[1] for k in ikeys], np.int32)
        return prow, pcol, ptx, pty, ptw, pth, pcid, irow, icol, len(keys)

    def __call__(self, inputs, labels):
        labels_np = np.asarray(labels, np.float32)
        A = self.num_anchors
        C = self.num_classes
        attrs = self.bbox_attrs

        # ---- host: sparse target assignment ----
        metas = []
        max_hw = 1
        for i, inp in enumerate(inputs):
            _, _, H, W = inp.shape
            max_hw = max(max_hw, H * W)
            metas.append(self._build_targets_sparse(labels_np, i, H, W))

        hw_lanes = _round_up(max_hw, _LANE)
        lane_tile = min(hw_lanes, _LANE_TILE_MAX)
        lanes = _round_up(hw_lanes, lane_tile)

        # ---- device: stack per-scale conf channels, run the fused kernel once ----
        conf_rows = []
        row_ranges = []
        row_cursor = 0
        for i, inp in enumerate(inputs):
            B, _, H, W = inp.shape
            HW = H * W
            R = B * A
            rows_pad = _round_up(R, _ROW_TILE)
            p = jnp.asarray(inp, jnp.float32)
            conf = p.reshape(B, A, attrs, HW)[:, :, 4, :].reshape(R, HW)
            conf = jnp.pad(conf, ((0, rows_pad - R), (0, lanes - HW)),
                           constant_values=_NEG_PAD)
            conf_rows.append(conf)
            row_ranges.append((row_cursor, row_cursor + rows_pad))
            row_cursor += rows_pad
        conf_all = jnp.concatenate(conf_rows, axis=0)
        partials = _run_conf_softplus(conf_all, lane_tile)   # (rows_total, gl*128)

        total = jnp.float32(0.0)
        for i, inp in enumerate(inputs):
            B, _, H, W = inp.shape
            HW = H * W
            N = float(B * A * HW)
            rs, re = row_ranges[i]
            dense_conf = jnp.sum(partials[rs:re, :])  # sum softplus(conf) over all cells

            prow, pcol, ptx, pty, ptw, pth, pcid, irow, icol, p_count = metas[i]
            pred_1d = jnp.asarray(inp, jnp.float32).reshape(-1)   # (B*A, attrs, HW) flat

            base = jnp.asarray(prow) * (attrs * HW) + jnp.asarray(pcol)
            px = jnp.take(pred_1d, base)
            py = jnp.take(pred_1d, base + HW)
            pw = jnp.take(pred_1d, base + 2 * HW)
            ph = jnp.take(pred_1d, base + 3 * HW)
            pc = jnp.take(pred_1d, base + 4 * HW)
            pcls = jnp.take(pred_1d, base[:, None] + (5 + jnp.arange(C)) * HW)   # (P, C)
            ptgt_logit = jnp.take(pred_1d, base + (5 + jnp.asarray(pcid)) * HW)  # (P,)

            ptx = jnp.asarray(ptx); pty = jnp.asarray(pty)
            ptw = jnp.asarray(ptw); pth = jnp.asarray(pth)

            # BCE-with-logits form: BCE(sigmoid(x), t) == softplus(x) - t*x
            # (matches nn.BCELoss with its -100 log clamp for |logit| < ~100).
            xy_sum = jnp.sum(_softplus(px) - ptx * px + _softplus(py) - pty * py)
            wh_sum = jnp.sum((pw - ptw) ** 2 + (ph - pth) ** 2)
            cls_sum = jnp.sum(_softplus(pcls)) - jnp.sum(ptgt_logit)
            conf_pos = jnp.sum(_softplus(pc) - pc)

            ibase = jnp.asarray(irow) * (attrs * HW) + jnp.asarray(icol)
            pc_ign = jnp.take(pred_1d, ibase + 4 * HW)
            conf_ign = 0.5 * jnp.sum(_softplus(pc_ign))

            # bce(conf*mask, mask) + 0.5*bce(conf*noobj, 0) summed over cells ==
            #   0.5*softplus over every cell (dense kernel)
            #   + (softplus - x) at mask cells  -  0.5*softplus at noobj-zeroed cells.
            conf_sum = 0.5 * dense_conf + conf_pos - conf_ign

            # NOTE: p_count == 0 -> 0/0 (NaN) for the cls term, matching PyTorch.
            scale_loss = ((self.w_xy * xy_sum + self.w_wh * wh_sum
                           + self.w_conf * conf_sum) / N
                          + self.w_cls * cls_sum / (p_count * C))
            total = total + scale_loss
        return total


# ------------------------------ numpy reference ---------------------------- #
# Mirrors the PyTorch module directly (dense masks, sigmoid + clamped-log BCE).

def _numpy_reference(loss_mod, inputs, labels):
    def sigmoid(x):
        with np.errstate(over="ignore"):
            return 1.0 / (1.0 + np.exp(-x))

    def bce(p, t):
        with np.errstate(divide="ignore", invalid="ignore"):
            logp = np.maximum(np.log(p), -100.0)
            log1mp = np.maximum(np.log(1.0 - p), -100.0)
        return -(t * logp + (1.0 - t) * log1mp)

    img_size = loss_mod.img_size
    A = loss_mod.num_anchors
    C = loss_mod.num_classes
    attrs = loss_mod.bbox_attrs

    lab = np.asarray(labels, np.float64).copy()
    nlabel = (lab.sum(axis=2) > 0).sum(axis=1).astype(int)
    lab[:, :, 1] /= img_size[0]
    lab[:, :, 3] /= img_size[0]
    lab[:, :, 2] /= img_size[1]
    lab[:, :, 4] /= img_size[1]

    total = 0.0
    for i, inp in enumerate(inputs):
        inp = np.asarray(inp, np.float64)
        B, _, H, W = inp.shape
        stride_h = img_size[1] / H
        stride_w = img_size[0] / W
        scaled_anchors = [(aw / stride_w, ah / stride_h) for aw, ah in loss_mod.anchors[i]]

        pred = inp.reshape(B, A, attrs, H, W).transpose(0, 1, 3, 4, 2)
        cx, cy = sigmoid(pred[..., 0]), sigmoid(pred[..., 1])
        w, h = pred[..., 2], pred[..., 3]
        conf, pcls = sigmoid(pred[..., 4]), sigmoid(pred[..., 5:])

        mask = np.zeros((B, A, H, W))
        noobj = np.ones((B, A, H, W))
        tx = np.zeros_like(mask); ty = np.zeros_like(mask)
        tw = np.zeros_like(mask); th = np.zeros_like(mask)
        tcls = np.zeros((B, A, H, W, C))
        for b in range(B):
            for g in range(nlabel[b]):
                gx = lab[b, g, 1] * W; gy = lab[b, g, 2] * H
                gw = lab[b, g, 3] * W; gh = lab[b, g, 4] * H
                gi = int(gx); gj = int(gy)
                ious = []
                for (aw, ah) in scaled_anchors:
                    iw = max(min(gw / 2, aw / 2) - max(-gw / 2, -aw / 2) + 1, 0.0)
                    ih = max(min(gh / 2, ah / 2) - max(-gh / 2, -ah / 2) + 1, 0.0)
                    inter = iw * ih
                    ious.append(inter / ((gw + 1) * (gh + 1) + (aw + 1) * (ah + 1)
                                         - inter + 1e-16))
                ious = np.asarray(ious)
                noobj[b, ious > loss_mod.ignore_threshold, gj, gi] = 0
                best = int(np.argmax(ious))
                mask[b, best, gj, gi] = 1
                tx[b, best, gj, gi] = gx - gi
                ty[b, best, gj, gi] = gy - gj
                tw[b, best, gj, gi] = math.log(gw / scaled_anchors[best][0] + 1e-16)
                th[b, best, gj, gi] = math.log(gh / scaled_anchors[best][1] + 1e-16)
                tcls[b, best, gj, gi, int(lab[b, g, 0])] = 1

        loss_x = bce(cx * mask, tx * mask).mean()
        loss_y = bce(cy * mask, ty * mask).mean()
        loss_w = ((w * mask - tw * mask) ** 2).mean()
        loss_h = ((h * mask - th * mask) ** 2).mean()
        loss_conf = (bce(conf * mask, mask).mean()
                     + 0.5 * bce(conf * noobj, noobj * 0.0).mean())
        m1 = mask == 1
        loss_cls = bce(pcls[m1], tcls[m1]).mean()
        total += (2.5 * (loss_x + loss_y) + 2.5 * (loss_w + loss_h)
                  + loss_conf + loss_cls)
    return float(total)


# ---------------------------------- main ----------------------------------- #

if __name__ == "__main__":
    key = jax.random.PRNGKey(0)
    num_classes = 4
    # 2 scales x 2 anchors each (so len(anchors) == len(anchors[i]) == 2,
    # matching the module's self.num_anchors usage).
    anchors = [[(10, 13), (16, 30)], [(33, 23), (62, 45)]]
    img_size = (64, 64)  # (width, height)
    B = 2
    attrs_ch = 2 * (5 + num_classes)  # 18 channels per scale

    k1, k2 = jax.random.split(key)
    x0 = jax.random.normal(k1, (B, attrs_ch, 16, 16), dtype=jnp.float32)
    x1 = jax.random.normal(k2, (B, attrs_ch, 8, 8), dtype=jnp.float32)

    labels = np.zeros((B, 4, 5), dtype=np.float32)
    labels[0, 0] = [1, 20.0, 24.0, 16.0, 20.0]   # class, cx, cy, w, h (pixels)
    labels[0, 1] = [3, 40.0, 48.0, 30.0, 24.0]
    labels[1, 0] = [0, 10.0, 10.0, 8.0, 8.0]

    loss_fn = YOLOv3LossPallas(anchors, num_classes, img_size)
    loss = loss_fn([x0, x1], labels)
    loss = jax.block_until_ready(loss)

    ref = _numpy_reference(loss_fn, [x0, x1], labels)
    assert np.isfinite(float(loss))
    np.testing.assert_allclose(float(loss), ref, rtol=5e-3, atol=5e-3)
    print("KERNEL_OK")
</pallas_src>

<mosaic_0001>
module attributes {stable_mosaic.version = 11 : i64} {
  func.func @_conf_softplus_partial_kernel(%arg0: i32, %arg1: i32, %arg2: memref<8x256xf32, #tpu.memory_space<vmem>>, %arg3: memref<8x128xf32, #tpu.memory_space<vmem>>) attributes {dimension_semantics = [#tpu.dimension_semantics<parallel>, #tpu.dimension_semantics<parallel>], iteration_bounds = array<i64: 2, 1>, scalar_prefetch = 0 : i64, scratch_operands = 0 : i64, tpu.core_type = #tpu.core_type<tc>, window_params = [{transform_indices = @transform_0, window_bounds = array<i64: 8, 256>}, {transform_indices = @transform_1, window_bounds = array<i64: 8, 128>}]} {
    %c0 = arith.constant 0 : index
    %c0_0 = arith.constant 0 : index
    %0 = vector.load %arg2[%c0, %c0_0] : memref<8x256xf32, #tpu.memory_space<vmem>>, vector<8x256xf32>
    %cst = arith.constant 0.000000e+00 : f32
    %1 = vector.broadcast %cst : f32 to vector<8x256xf32>
    %2 = arith.maximumf %0, %1 : vector<8x256xf32>
    %3 = math.absf %0 : vector<8x256xf32>
    %cst_1 = arith.constant 0.000000e+00 : f32
    %4 = vector.broadcast %cst_1 : f32 to vector<8x256xf32>
    %5 = arith.subf %4, %3 : vector<8x256xf32>
    %6 = math.exp %5 : vector<8x256xf32>
    %7 = math.log1p %6 : vector<8x256xf32>
    %8 = arith.addf %2, %7 : vector<8x256xf32>
    %9 = vector.extract_strided_slice %8 {offsets = [0, 0], sizes = [8, 128], strides = [1, 1]} : vector<8x256xf32> to vector<8x128xf32>
    %10 = vector.extract_strided_slice %8 {offsets = [0, 128], sizes = [8, 128], strides = [1, 1]} : vector<8x256xf32> to vector<8x128xf32>
    %11 = arith.addf %9, %10 : vector<8x128xf32>
    %c0_2 = arith.constant 0 : index
    %c0_3 = arith.constant 0 : index
    %12 = vector.load %arg3[%c0_2, %c0_3] : memref<8x128xf32, #tpu.memory_space<vmem>>, vector<8x128xf32>
    tpu.vector_store %arg3[%c0_2, %c0_3], %11 {strides = array<i32>} : memref<8x128xf32, #tpu.memory_space<vmem>>, vector<8x128xf32>,
    return
  }
  func.func @transform_0(%arg0: i32, %arg1: i32) -> (i32, i32) {
    %c0_i32 = arith.constant 0 : i32
    return %arg0, %arg1 : i32, i32
  }
  func.func @transform_1(%arg0: i32, %arg1: i32) -> (i32, i32) {
    %c0_i32 = arith.constant 0 : i32
    return %arg0, %arg1 : i32, i32
  }
}

</mosaic_0001>

<bundles_post_ra>
// kernel: tpu_custom_call.1
= control target key start
LH: loop header
LB: loop body
LE: loop exit
PB: predicated region body
PF: predicated region fallthrough
CT: control target
= control target key end

     0   :  { %6 = vsyncpa [#allocation3], 0  ;;  %s617_s0 = inlined_call_operand.hbm [shape: f32[16,256], index: 0, kind: input, shape index: {}]   ;;  %s618_s1 = inlined_call_operand.hbm [shape: f32[16,128], index: 1, kind: output, shape index: {}]  }
   0x1   :  { %8 = vsyncpa [#allocation3 + $0x1], 0 }
   0x2   :  { %9 = vsyncpa [#allocation4], 0 }
   0x3   :  { %11 = vsyncpa [#allocation4 + $0x1], 0  ;;  %s496_s6 = smov 0   ;;  %s498_s7 = smov 0  }
   0x4   :  { %s500_s8 = smov 0   ;;  %s502_s9 = smov 0  }
   0x5   :  { %s504_s10 = smov 0   ;;  %s506_s11 = smov 0  }
   0x6 LB: > { %s287_s12 = sadd.s32 4294967295, %s484_s11   ;;  %s288_s13 = sadd.s32 4294967294, %s484_s11   ;;  %s484_s11 = sphi %s506_s11, %s17_s11   ;;  %s480_s10 = sphi %s504_s10, %s627_s10   ;;  %s476_s9 = sphi %s502_s9, %s626_s9   ;;  %s472_s8 = sphi %s500_s8, %s625_s8   ;;  %s468_s7 = sphi %s498_s7, %s624_s7   ;;  %s464_s6 = sphi %s496_s6, %s623_s6  }
   0x7   : > { %s29_s14 = sadd.s32 1, %s480_s10  ;;  %s38_s15 = sadd.s32 1, %s472_s8 }
   0x8   : > { %p31_p0 = scmp.ge.s32.totalorder %s29_s14, 2  ;;  %p45_p1 = scmp.ne.s32.totalorder %s472_s8, %s468_s7 }
   0x9   : > { %p46_p2 = scmp.eq.s32.totalorder %s484_s11, 0  ;;  %p51_p3 = scmp.ne.s32.totalorder %s468_s7, %s464_s6 }
   0xa   : > { %s629_s14 = smov (%p31_p0, %s29_s14), 0  ;;  %p52_p5 = scmp.eq.s32.totalorder %s287_s12, 0 }
   0xb   : > { %p537_p4 = por %p46_p2, %p45_p1  ;;  %s33_s17 = ssub.s32 %s480_s10, %s629_s14 }
   0xc   : > { %p77_p6 = scmp.eq.s32.totalorder %s287_s12, 1  ;;  %p36_p7 = scmp.eq.s32.totalorder %s33_s17, 0 }
   0xd   : > { %p543_p8 = por %p52_p5, %p51_p3  ;;  %p83_p10 = scmp.eq.s32.totalorder %s288_s13, 1 }
   0xe   : > { %p547_p9 = por %p77_p6, %p45_p1  ;;  %p290_p12 = scmp.ge.s32.totalorder %s484_s11, 2 }
   0xf   : > { %s552_s20 = scalar_select %p36_p7, %s472_s8, %s38_s15  }
  0x10   : > { %p554_p11 = por %p83_p10, %p51_p3  ;;  %p314_p13 = scmp.lt.s32.totalorder %s484_s11, 2 }
  0x11   : > { %s103_s22 = sand.u32 1, %s472_s8   ;;  %s301_s24 = sshll.u32 %s480_s10, 4 }
  0x12   : > { %s291_s23 = sshll.u32 %s103_s22, 4  ;;  %s114_s27 = scalar_lea.hbm %s617_s0, %s301_s24 }
  0x13   : > { %s107_s28 = scalar_lea.vmem [#allocation2], %s291_s23  ;;  %s116_s30 = sshll.u32 %s114_s27, 4  ;;  %s117_s30 = int_to_ptr.hbm [resolvable:$true] %s116_s30 }
  0x14   : > { %s118_s29 = sshll.u32 %s107_s28, 4  ;;  %p307_p0 = pnand %p314_p13, %p537_p4  ;;  %s119_s29 = int_to_ptr.vmem [resolvable:$true] %s118_s29 }
  0x15   : > { %p294_p1 = scmp.ge.s32.totalorder %s484_s11, 1  ;;  %p123_p2 = scmp.lt.s32.totalorder %s484_s11, 3 }
  0x16   : > { %s104_s2 = scalar_lea.sflag [#allocation3], %s103_s22 }
  0x17   : > { %309 = dma.hbm_to_vmem [thread:$0]  (!%p307_p0), %s117_s30, 256, %s119_s29, %s104_s2  }
  0x18   : > { %p124_p3 = pnand %p294_p1, %p123_p2 }
  0x19   : > { %s570_s3 = sand.u32 (!%p124_p3), 1, %s468_s7  }
  0x1a   : > { %127 = sbr.rel (%p124_p3) target bundleno = 66 (0x42), region = 24  ;;  %s295_s4 = sshll.u32 (!%p124_p3), %s570_s3, 4 }
  0x1b   : > { %s130_s5 = scalar_lea.sflag (!%p124_p3), [#allocation3], %s570_s3  ;;  %s133_s12 = scalar_lea.vmem (!%p124_p3), [#allocation2], %s295_s4 }
  0x1f   : > { %455 = dma.done.wait (%p543_p8), %s130_s5, 256  }
  0x20   : > { %457 = vsyncadd (%p543_p8), %s130_s5, 4294967040  ;;  %v154_v0 = vld [vmem:[%s133_s12] sm:$0xff]  ;;  %v155_v1 = vld [vmem:[%s133_s12 + $0x8] sm:$0xff]  ;;  %s296_s13 = sshll.u32 %s570_s3, 3  ;;  %s298_s15 = sshll.u32 %s476_s9, 3 }
  0x21   : > { %v158_v2 = vand.u32 2147483647, %v154_v0  ;;  %v159_v3 = vand.u32 2147483647, %v155_v1  ;;  %v156_v20 = vmax.f32 %v154_v0, 0.0  ;;  %v157_v23 = vmax.f32 %v155_v1, 0.0  ;;  %s200_s18 = scalar_lea.hbm %s618_s1, %s298_s15 }
  0x22   : > { %s152_s9 = scalar_lea.vmem [#allocation5], %s296_s13  ;;  %s204_s23 = sshll.u32 %s200_s18, 4  ;;  %s205_s23 = int_to_ptr.hbm [resolvable:$true] %s204_s23 }
  0x23   : > { %v160_v4 = vsub.f32 0.0, %v158_v2  ;;  %v161_v5 = vsub.f32 0.0, %v159_v3  ;;  %s202_s22 = sshll.u32 %s152_s9, 4  ;;  %s189_s24 = scalar_lea.sflag [#allocation4], %s570_s3  ;;  %s203_s22 = int_to_ptr.vmem [resolvable:$true] %s202_s22 }
  0x24   : > { %s416_s25 = sshra.s32 %s205_s23, 4  ;;  %s422_s29 = scalar_lea.hbm %s618_s1, 16  ;;  %s417_s25 = int_to_ptr.hbm [resolvable:$true] %s416_s25 }
  0x25   : > { %v162_v6 = vmul.f32 1.442695, %v160_v4  ;;  %v164_v7 = vmul.f32 1.442695, %v161_v5  ;;  %s418_s26 = scalar_lea.hbm %s417_s25, 8  ;;  %p423_p7 = scmp.lt.s32.totalorder %s417_s25, %s618_s1 }
  0x26   : > { %p419_p4 = scmp.ne.s32.totalorder %s417_s25, %s418_s26  ;;  %p424_p8 = scmp.lt.s32.totalorder %s422_s29, %s418_s26 }
  0x27   : > { %364 = vpow2.f32 %v162_v6 }
  0x28   : > { %366 = vpow2.f32 %v164_v7  ;;  %p420_p5 = pnand %p419_p4, %p547_p9  ;;  %p425_p10 = por %p424_p8, %p423_p7 }
  0x2a   : > { %p421_p6 = pneg %p420_p5 }
  0x2c   : > { %p426_p13 = pnand %p425_p10, %p421_p6 }
  0x2d   : > { %v365_v8 = vpop.eup %364 }
  0x2e   : > { %v367_v9 = vpop.eup %366  ;;  %v166_v10 = vadd.f32 1.0, %v365_v8  ;;  %v169_v11 = vmul.f32 -0.5, %v365_v8  ;;  %v172_v15 = vand.u32 2147483647, %v365_v8 }
  0x2f   : > { %v175_v12 = vadd.f32 1.0, %v367_v9  ;;  %v178_v13 = vmul.f32 -0.5, %v367_v9  ;;  %v181_v17 = vand.u32 2147483647, %v367_v9 }
  0x30   : > { %368 = vlog2.f32 %v166_v10  ;;  %v170_v14 = vadd.f32 1.0, %v169_v11  ;;  %vm173_vm0 = vcmp.lt.f32.partialorder %v172_v15, 0.0004427343 }
  0x31   : > { %370 = vlog2.f32 %v175_v12  ;;  %v179_v16 = vadd.f32 1.0, %v178_v13  ;;  %vm182_vm1 = vcmp.lt.f32.partialorder %v181_v17, 0.0004427343 }
  0x32   : > { %v171_v18 = vmul.f32 %v365_v8, %v170_v14 }
  0x33   : > { %v180_v21 = vmul.f32 %v367_v9, %v179_v16 }
  0x36   : > { %v369_v19 = vpop.eup %368 }
  0x37   : > { %v371_v22 = vpop.eup %370  ;;  %v168_v24 = vmul.f32 0.6931472, %v369_v19 }
  0x38   : > { %v177_v25 = vmul.f32 0.6931472, %v371_v22 }
  0x39   : > { %v174_v26 = vsel %vm173_vm0, %v171_v18, %v168_v24 }
  0x3a   : > { %v183_v27 = vsel %vm182_vm1, %v180_v21, %v177_v25  ;;  %v184_v28 = vadd.f32 %v174_v26, %v156_v20 }
  0x3b   : > { %v185_v29 = vadd.f32 %v183_v27, %v157_v23 }
  0x3d   : > { %v186_v30 = vadd.f32 %v185_v29, %v184_v28 }
  0x3f   : > { %187 = vst [vmem:[%s152_s9] sm:$0xff] %v186_v30 }
  0x40   : > { %429 = shalt.err (!%p426_p13)
}
  0x41   : > { %304 = dma.vmem_to_hbm [thread:$0]  (%p547_p9), %s203_s22, 128, %s205_s23, %s189_s24  }
  0x42 PF: > { %s216_s3 = sand.u32 1, %s464_s6   ;;  %p311_p0 = pnand %p290_p12, %p554_p11 }
  0x43   : > { %s217_s4 = scalar_lea.sflag [#allocation4], %s216_s3 }
  0x44   : > { %p312_p1 = pneg %p311_p0 }
  0x46   : > { %459 = dma.done.wait (%p312_p1), %s217_s4, 128  }
  0x47   : > { %461 = vsyncadd (%p312_p1), %s217_s4, 4294967168  ;;  %s17_s11 = sadd.s32 1, %s484_s11   ;;  %s623_s6 = smov %s468_s7 }
  0x48   : > { %p14_p2 = scmp.ge.s32.totalorder %s17_s11, 4   ;;  %s624_s7 = smov %s472_s8 }
  0x49   : > { %s625_s8 = smov %s552_s20  ;;  %s626_s9 = smov %s480_s10 }
  0x4a   : > { %s627_s10 = smov %s629_s14  ;;  %16 = sbr.rel (!%p14_p2) target bundleno = 6 (0x6), region = 69 }
  0x4f   :  { %223 = vsyncpa [#allocation3], 1 }
  0x50   :  { %225 = vsyncpa [#allocation3 + $0x1], 1 }
  0x51   :  { %226 = vsyncpa [#allocation4], 1 }
  0x52   :  { %228 = vsyncpa [#allocation4 + $0x1], 1 }

</bundles_post_ra>
